<compile_context>
chip_gen: v7x
topology: tpu7x:2x2x1
jax: 0.10.0
libtpu: 0.0.40
codegen_flags: <defaults>
</compile_context>

<pallas_src>
import math
import functools

import jax
import jax.numpy as jnp
from jax.experimental import pallas as pl
from jax.experimental.pallas import tpu as pltpu


_VMEM_LIMIT_BYTES = 48 * 1024 * 1024      # safe on v5e/v6e (128 MiB) and v7x (64 MiB)
_FUSED_X_VMEM_CAP = 16 * 1024 * 1024      # max VMEM for the double-buffered x slab


def _round_up(v, m):
    return ((v + m - 1) // m) * m


# ---------------------------------------------------------------------------
# Kernel:  out[i-block] = G[i-block, :] @ (x @ W + bias)
#   grid = (num_row_blocks, num_k_blocks); k (reduction) is the last axis.
#   fuse_xw=True : refs = (x, W, bias, G, out, acc)   -- xw slab built in-kernel
#   fuse_xw=False: refs = (xw, G, out, acc)           -- xw precomputed outside
# ---------------------------------------------------------------------------
def _hgnn_kernel(*refs, n_valid, tk, need_k_mask, fuse_xw, compute_dtype):
    if fuse_xw:
        x_ref, w_ref, b_ref, g_ref, o_ref, acc_ref = refs
    else:
        xw_ref, g_ref, o_ref, acc_ref = refs

    k = pl.program_id(1)

    @pl.when(k == 0)
    def _init():
        acc_ref[...] = jnp.zeros_like(acc_ref)

    if fuse_xw:
        # (tk, F_pad) slab of xw = x @ W + bias; MXU, f32 accumulation.
        xw = jnp.dot(x_ref[...], w_ref[...], preferred_element_type=jnp.float32)
        xw = (xw + b_ref[...]).astype(compute_dtype)
    else:
        xw = xw_ref[...]

    # G tile is read in its HBM dtype and cast in-VMEM (no host-side prep pass).
    g = g_ref[...].astype(compute_dtype)
    if need_k_mask:
        # Zero the contraction-dim remainder: columns >= N hold unspecified
        # (possibly NaN) out-of-bounds data and must not reach the MXU.
        col = jax.lax.broadcasted_iota(jnp.int32, g_ref.shape, 1)
        g = jnp.where(col < (n_valid - k * tk), g, 0)

    acc_ref[...] += jnp.dot(g, xw, preferred_element_type=jnp.float32)

    @pl.when(k == pl.num_programs(1) - 1)
    def _store():
        o_ref[...] = acc_ref[...].astype(o_ref.dtype)


# ---------------------------------------------------------------------------
# Wrapper
# ---------------------------------------------------------------------------
def hgnn_conv_forward(x, G, weight, bias=None, *,
                      compute_dtype=jnp.bfloat16, out_dtype=jnp.float32,
                      row_tile=1024, k_tile=2048):
    """HGNN_conv.forward:  G @ (x @ weight + bias)."""
    N, in_ft = x.shape
    in_ft_w, out_ft = weight.shape
    assert in_ft == in_ft_w and G.shape == (N, N)
    assert row_tile % 8 == 0 and k_tile % 128 == 0

    F_pad = _round_up(out_ft, 128)          # lane-dense output; never pad past need
    in_ft_pad = _round_up(in_ft, 128)

    # --- tile choice for G (the only large operand) ---------------------------
    if N <= 256:
        tm = N                               # single full-dim row block (legal)
    else:
        # Keep >= 2 row blocks so the "parallel" axis can shard over v7x's 2 TCs.
        tm = min(row_tile, _round_up(-(-N // 2), 8))
    tk = N if N <= k_tile else k_tile        # full dim, or 128-aligned tile
    need_k_mask = (N % tk) != 0
    n_i = pl.cdiv(N, tm)
    n_k = pl.cdiv(N, tk)
    Nk_pad = _round_up(N, tk)                # contraction axis, padded for x / xw

    # --- small-operand prep (x, W, bias only; G is untouched) -----------------
    x_p = jnp.pad(x, ((0, Nk_pad - N), (0, in_ft_pad - in_ft))).astype(compute_dtype)
    w_p = jnp.pad(weight, ((0, in_ft_pad - in_ft), (0, F_pad - out_ft))).astype(compute_dtype)
    if bias is not None:
        b_p = jnp.pad(bias.astype(jnp.float32), (0, F_pad - out_ft)).reshape(1, F_pad)
    else:
        b_p = jnp.zeros((1, F_pad), jnp.float32)

    # --- fuse decision: is recomputing xw from x,W per row-block cheap? -------
    g_item = G.dtype.itemsize
    x_item = jnp.dtype(compute_dtype).itemsize
    g_bytes = N * N * g_item
    x_reread = (n_i - 1) * Nk_pad * in_ft_pad * x_item      # extra HBM reads if fused
    x_block_vmem = 2 * tk * in_ft_pad * x_item              # double-buffered x slab
    fuse_xw = (x_reread <= g_bytes // 8) and (x_block_vmem <= _FUSED_X_VMEM_CAP)

    g_spec = pl.BlockSpec((tm, tk), lambda i, k: (i, k))
    out_spec = pl.BlockSpec((tm, F_pad), lambda i, k: (i, 0))

    if fuse_xw:
        in_specs = [
            pl.BlockSpec((tk, in_ft_pad), lambda i, k: (k, 0)),      # x slab per k
            pl.BlockSpec((in_ft_pad, F_pad), lambda i, k: (0, 0)),   # W (resident, tiny)
            pl.BlockSpec((1, F_pad), lambda i, k: (0, 0)),           # bias (resident)
            g_spec,
        ]
        args = (x_p, w_p, b_p, G)
        flops = 2 * N * N * F_pad + 2 * n_i * Nk_pad * in_ft_pad * F_pad
        bytes_accessed = (g_bytes + n_i * Nk_pad * in_ft_pad * x_item
                          + in_ft_pad * F_pad * x_item + N * F_pad * 4)
    else:
        # xw is tiny next to G: one plain XLA dot (per review), then streamed.
        xw = jnp.dot(x_p, w_p, preferred_element_type=jnp.float32) + b_p
        xw = xw.astype(compute_dtype)
        in_specs = [
            pl.BlockSpec((tk, F_pad), lambda i, k: (k, 0)),          # xw slab per k
            g_spec,
        ]
        args = (xw, G)
        flops = 2 * N * N * F_pad
        bytes_accessed = (g_bytes + n_i * Nk_pad * F_pad * x_item + N * F_pad * 4)

    kernel = functools.partial(
        _hgnn_kernel, n_valid=N, tk=tk, need_k_mask=need_k_mask,
        fuse_xw=fuse_xw, compute_dtype=compute_dtype)

    out_p = pl.pallas_call(
        kernel,
        out_shape=jax.ShapeDtypeStruct((N, F_pad), out_dtype),
        grid_spec=pltpu.PrefetchScalarGridSpec(
            num_scalar_prefetch=0,
            grid=(n_i, n_k),
            in_specs=in_specs,
            out_specs=out_spec,
            scratch_shapes=[pltpu.VMEM((tm, F_pad), jnp.float32)],
        ),
        compiler_params=pltpu.CompilerParams(
            dimension_semantics=("parallel", "arbitrary"),
            vmem_limit_bytes=_VMEM_LIMIT_BYTES,
        ),
        cost_estimate=pl.CostEstimate(
            flops=int(flops), transcendentals=0,
            bytes_accessed=int(bytes_accessed)),
    )(*args)

    return out_p[:, :out_ft] if F_pad != out_ft else out_p


def init_params(key, in_ft, out_ft, bias=True, dtype=jnp.float32):
    """Deterministic replica of HGNN_conv.reset_parameters()."""
    stdv = 1.0 / math.sqrt(out_ft)
    kw, kb = jax.random.split(key)
    weight = jax.random.uniform(kw, (in_ft, out_ft), dtype, -stdv, stdv)
    b = jax.random.uniform(kb, (out_ft,), dtype, -stdv, stdv) if bias else None
    return weight, b


if __name__ == "__main__":
    key = jax.random.PRNGKey(0)
    k1, k2, k3, k4, k5, k6 = jax.random.split(key, 6)

    # --- case 1: aligned small shapes, bf16 compute (fused in-kernel xw) -----
    N, in_ft, out_ft = 128, 64, 32
    x = jax.random.normal(k1, (N, in_ft), jnp.float32)
    G = jax.random.normal(k2, (N, N), jnp.float32)
    weight, bias = init_params(k3, in_ft, out_ft, bias=True)

    out = jax.block_until_ready(hgnn_conv_forward(x, G, weight, bias))
    assert out.shape == (N, out_ft)

    # Reference 1: same bf16 quantization as the kernel, f32 math -> tight check.
    xb = x.astype(jnp.bfloat16).astype(jnp.float32)
    wb = weight.astype(jnp.bfloat16).astype(jnp.float32)
    gb = G.astype(jnp.bfloat16).astype(jnp.float32)
    xw_q = (xb @ wb + bias).astype(jnp.bfloat16).astype(jnp.float32)
    ref_q = gb @ xw_q
    assert jnp.allclose(out, ref_q, atol=1e-1, rtol=1e-2), \
        float(jnp.max(jnp.abs(out - ref_q)))
    # Reference 2: pure f32 PyTorch semantics -> loose check (bf16 on purpose).
    ref_f32 = G @ (x @ weight + bias)
    assert jnp.allclose(out, ref_f32, atol=1.0, rtol=0.1)

    # --- case 2: unaligned shapes, f32 compute, small tiles ------------------
    # Exercises cdiv grid, partial out-of-bounds row blocks, in-kernel k-mask,
    # and the non-fused (precomputed xw) path.
    N2, in2, out2 = 300, 40, 24
    x2 = jax.random.normal(k4, (N2, in2), jnp.float32)
    G2 = jax.random.normal(k5, (N2, N2), jnp.float32)
    w2, b2 = init_params(k6, in2, out2, bias=True)

    out2v = jax.block_until_ready(
        hgnn_conv_forward(x2, G2, w2, b2, compute_dtype=jnp.float32,
                          row_tile=128, k_tile=128))
    assert out2v.shape == (N2, out2)
    ref2 = G2 @ (x2 @ w2 + b2)
    assert jnp.allclose(out2v, ref2, atol=0.25, rtol=2e-2), \
        float(jnp.max(jnp.abs(out2v - ref2)))

    print("KERNEL_OK")
</pallas_src>

<mosaic_0001>
module attributes {stable_mosaic.version = 11 : i64} {
  func.func @_hgnn_kernel(%arg0: i32, %arg1: i32, %arg2: memref<128x128xbf16, #tpu.memory_space<vmem>>, %arg3: memref<128x128xbf16, #tpu.memory_space<vmem>>, %arg4: memref<1x128xf32, #tpu.memory_space<vmem>>, %arg5: memref<128x128xf32, #tpu.memory_space<vmem>>, %arg6: memref<128x128xf32, #tpu.memory_space<vmem>>, %arg7: memref<128x128xf32, #tpu.memory_space<vmem>>) attributes {dimension_semantics = [#tpu.dimension_semantics<parallel>, #tpu.dimension_semantics<arbitrary>], iteration_bounds = array<i64: 1, 1>, scalar_prefetch = 0 : i64, scratch_operands = 1 : i64, tpu.core_type = #tpu.core_type<tc>, window_params = [{transform_indices = @transform_0, window_bounds = array<i64: 128, 128>}, {pipeline_mode = #tpu.pipeline_mode<synchronous>, transform_indices = @transform_1, window_bounds = array<i64: 128, 128>}, {pipeline_mode = #tpu.pipeline_mode<synchronous>, transform_indices = @transform_2, window_bounds = array<i64: 1, 128>}, {transform_indices = @transform_3, window_bounds = array<i64: 128, 128>}, {transform_indices = @transform_4, window_bounds = array<i64: 128, 128>}]} {
    %c0_i32 = arith.constant 0 : i32
    %0 = arith.cmpi eq, %arg1, %c0_i32 : i32
    %1 = arith.extui %0 : i1 to i32
    %c0_i32_0 = arith.constant 0 : i32
    %2 = arith.cmpi ne, %1, %c0_i32_0 : i32
    scf.if %2 {
      %cst_15 = arith.constant 0.000000e+00 : f32
      %19 = vector.broadcast %cst_15 : f32 to vector<128x128xf32>
      %c0_16 = arith.constant 0 : index
      %c0_17 = arith.constant 0 : index
      %20 = vector.load %arg7[%c0_16, %c0_17] : memref<128x128xf32, #tpu.memory_space<vmem>>, vector<128x128xf32>
      tpu.vector_store %arg7[%c0_16, %c0_17], %19 {strides = array<i32>} : memref<128x128xf32, #tpu.memory_space<vmem>>, vector<128x128xf32>,
    } else {
    }
    %c0 = arith.constant 0 : index
    %c0_1 = arith.constant 0 : index
    %3 = vector.load %arg2[%c0, %c0_1] : memref<128x128xbf16, #tpu.memory_space<vmem>>, vector<128x128xbf16>
    %c0_2 = arith.constant 0 : index
    %c0_3 = arith.constant 0 : index
    %4 = vector.load %arg3[%c0_2, %c0_3] : memref<128x128xbf16, #tpu.memory_space<vmem>>, vector<128x128xbf16>
    %cst = arith.constant dense<0.000000e+00> : vector<128x128xf32>
    %5 = tpu.matmul %3, %4, %cst {dimension_numbers = #tpu.dot_dimension_numbers<[1], [0], [0], [1], [0, 0, 1, 1], [], []>} : vector<128x128xbf16>, vector<128x128xbf16>, vector<128x128xf32> -> vector<128x128xf32>
    %c0_4 = arith.constant 0 : index
    %c0_5 = arith.constant 0 : index
    %6 = vector.load %arg4[%c0_4, %c0_5] : memref<1x128xf32, #tpu.memory_space<vmem>>, vector<1x128xf32>
    %7 = vector.broadcast %6 : vector<1x128xf32> to vector<128x128xf32>
    %8 = arith.addf %5, %7 : vector<128x128xf32>
    %9 = arith.truncf %8 : vector<128x128xf32> to vector<128x128xbf16>
    %c0_6 = arith.constant 0 : index
    %c0_7 = arith.constant 0 : index
    %10 = vector.load %arg5[%c0_6, %c0_7] : memref<128x128xf32, #tpu.memory_space<vmem>>, vector<128x128xf32>
    %11 = arith.truncf %10 : vector<128x128xf32> to vector<128x128xbf16>
    %c0_8 = arith.constant 0 : index
    %c0_9 = arith.constant 0 : index
    %12 = vector.load %arg7[%c0_8, %c0_9] : memref<128x128xf32, #tpu.memory_space<vmem>>, vector<128x128xf32>
    %cst_10 = arith.constant dense<0.000000e+00> : vector<128x128xf32>
    %13 = tpu.matmul %11, %9, %cst_10 {dimension_numbers = #tpu.dot_dimension_numbers<[1], [0], [0], [1], [0, 0, 1, 1], [], []>} : vector<128x128xbf16>, vector<128x128xbf16>, vector<128x128xf32> -> vector<128x128xf32>
    %14 = arith.addf %12, %13 : vector<128x128xf32>
    %c0_11 = arith.constant 0 : index
    %c0_12 = arith.constant 0 : index
    %15 = vector.load %arg7[%c0_11, %c0_12] : memref<128x128xf32, #tpu.memory_space<vmem>>, vector<128x128xf32>
    tpu.vector_store %arg7[%c0_11, %c0_12], %14 {strides = array<i32>} : memref<128x128xf32, #tpu.memory_space<vmem>>, vector<128x128xf32>,
    %c0_i32_13 = arith.constant 0 : i32
    %16 = arith.cmpi eq, %arg1, %c0_i32_13 : i32
    %17 = arith.extui %16 : i1 to i32
    %c0_i32_14 = arith.constant 0 : i32
    %18 = arith.cmpi ne, %17, %c0_i32_14 : i32
    scf.if %18 {
      %c0_15 = arith.constant 0 : index
      %c0_16 = arith.constant 0 : index
      %19 = vector.load %arg7[%c0_15, %c0_16] : memref<128x128xf32, #tpu.memory_space<vmem>>, vector<128x128xf32>
      %c0_17 = arith.constant 0 : index
      %c0_18 = arith.constant 0 : index
      %20 = vector.load %arg6[%c0_17, %c0_18] : memref<128x128xf32, #tpu.memory_space<vmem>>, vector<128x128xf32>
      tpu.vector_store %arg6[%c0_17, %c0_18], %19 {strides = array<i32>} : memref<128x128xf32, #tpu.memory_space<vmem>>, vector<128x128xf32>,
    } else {
    }
    return
  }
  func.func @transform_0(%arg0: i32, %arg1: i32) -> (i32, i32) {
    %c0_i32 = arith.constant 0 : i32
    %c0_i32_0 = arith.constant 0 : i32
    return %arg1, %c0_i32 : i32, i32
  }
  func.func @transform_1(%arg0: i32, %arg1: i32) -> (i32, i32) {
    %c0_i32 = arith.constant 0 : i32
    %c0_i32_0 = arith.constant 0 : i32
    %c0_i32_1 = arith.constant 0 : i32
    return %c0_i32, %c0_i32_0 : i32, i32
  }
  func.func @transform_2(%arg0: i32, %arg1: i32) -> (i32, i32) {
    %c0_i32 = arith.constant 0 : i32
    %c0_i32_0 = arith.constant 0 : i32
    %c0_i32_1 = arith.constant 0 : i32
    return %c0_i32, %c0_i32_0 : i32, i32
  }
  func.func @transform_3(%arg0: i32, %arg1: i32) -> (i32, i32) {
    %c0_i32 = arith.constant 0 : i32
    return %arg0, %arg1 : i32, i32
  }
  func.func @transform_4(%arg0: i32, %arg1: i32) -> (i32, i32) {
    %c0_i32 = arith.constant 0 : i32
    %c0_i32_0 = arith.constant 0 : i32
    return %arg0, %c0_i32 : i32, i32
  }
}

</mosaic_0001>

<bundles_post_ra>
// kernel: tpu_custom_call.1
= control target key start
LH: loop header
LB: loop body
LE: loop exit
PB: predicated region body
PF: predicated region fallthrough
CT: control target
= control target key end

     0   :  { %9 = vsyncpa [#allocation4], 0  ;;  %s870_s0 = inlined_call_operand.hbm [shape: bf16[128,128], index: 0, kind: input, shape index: {}]   ;;  %s871_s1 = inlined_call_operand.hbm [shape: bf16[128,128], index: 1, kind: input, shape index: {}]   ;;  %s872_s2 = inlined_call_operand.vmem [shape: f32[1,128], index: 2, kind: input, shape index: {}]   ;;  %s873_s3 = inlined_call_operand.hbm [shape: f32[128,128], index: 3, kind: input, shape index: {}]   ;;  %s874_s4 = inlined_call_operand.hbm [shape: f32[128,128], index: 4, kind: output, shape index: {}]  }
   0x1   :  { %10 = vsyncpa [#allocation7], 0 }
   0x2   :  { %11 = vsyncpa [#allocation5], 0  ;;  %s773_s15 = smov [#allocation6]   ;;  %s774_s17 = smov [#allocation3]  }
   0x3   :  { %s29_s16 = sshll.u32 %s773_s15, 4  ;;  %s17_s18 = sshll.u32 %s774_s17, 4  ;;  %s30_s16 = int_to_ptr.vmem [resolvable:$true] %s29_s16  ;;  %s806_s18 = int_to_ptr.vmem [resolvable:$true] %s17_s18 }
   0x4   :  { %s679_s21 = scalar_lea.hbm %s871_s1, 1024 }
   0x5   :  { %p680_p0 = scmp.ne.s32.totalorder %s871_s1, %s679_s21  ;;  %p683_p1 = scmp.lt.u32.totalorder %s679_s21, %s871_s1 }
   0x7   :  { %p685_p2 = pnand %p683_p1, %p680_p0 }
   0x9   :  { %688 = shalt.err (!%p685_p2)
}
   0xa   :  { %s689_s26 = scalar_lea.vmem %s30_s16, 1024  ;;  %p694_p4 = scmp.lt.s32.totalorder %s30_s16, %s30_s16 }
   0xb   :  { %p690_p3 = scmp.ne.s32.totalorder %s30_s16, %s689_s26  ;;  %p695_p5 = scmp.lt.s32.totalorder %s689_s26, %s689_s26 }
   0xd   :  { %p696_p6 = por %p695_p5, %p694_p4 }
   0xf   :  { %p697_p7 = pnand %p696_p6, %p690_p3 }
  0x11   :  { %700 = shalt.err (!%p697_p7)
}
  0x12   :  { %s775_s27 = smov 64   ;;  %s776_s28 = smov 4  }
  0x13   :  { %35 = dma.hbm_to_vmem [thread:$0]  %s871_s1, 1024, %s30_s16, [#allocation7], %s775_s27, %s775_s27, %s776_s28  }
  0x14   :  { %s701_s7 = scalar_lea.hbm %s870_s0, 1024 }
  0x15   :  { %p702_p8 = scmp.ne.s32.totalorder %s870_s0, %s701_s7  ;;  %p705_p9 = scmp.lt.u32.totalorder %s701_s7, %s870_s0 }
  0x17   :  { %p707_p10 = pnand %p705_p9, %p702_p8 }
  0x19   :  { %710 = shalt.err (!%p707_p10)
}
  0x1a   :  { %s711_s12 = scalar_lea.vmem %s806_s18, 1024  ;;  %p716_p12 = scmp.lt.s32.totalorder %s806_s18, %s806_s18 }
  0x1b   :  { %p712_p11 = scmp.ne.s32.totalorder %s806_s18, %s711_s12  ;;  %p717_p13 = scmp.lt.s32.totalorder %s711_s12, %s711_s12 }
  0x1d   :  { %p718_p0 = por %p717_p13, %p716_p12 }
  0x1f   :  { %p719_p1 = pnand %p718_p0, %p712_p11 }
  0x21   :  { %722 = shalt.err (!%p719_p1)
}
  0x22   :  { %23 = dma.hbm_to_vmem [thread:$0]  %s870_s0, 1024, %s806_s18, [#allocation4], %s775_s27, %s775_s27, %s776_s28  }
  0x23   :  { %s777_s14 = smov [#allocation8]   ;;  %s723_s19 = scalar_lea.hbm %s873_s3, 2048 }
  0x24   :  { %s43_s15 = sshll.u32 %s777_s14, 4  ;;  %p724_p2 = scmp.ne.s32.totalorder %s873_s3, %s723_s19  ;;  %s44_s15 = int_to_ptr.vmem [resolvable:$true] %s43_s15 }
  0x25   :  { %p727_p3 = scmp.lt.u32.totalorder %s723_s19, %s873_s3 }
  0x27   :  { %p729_p4 = pnand %p727_p3, %p724_p2 }
  0x29   :  { %732 = shalt.err (!%p729_p4)
}
  0x2a   :  { %s733_s24 = scalar_lea.vmem %s44_s15, 2048  ;;  %p738_p6 = scmp.lt.s32.totalorder %s44_s15, %s44_s15 }
  0x2b   :  { %p734_p5 = scmp.ne.s32.totalorder %s44_s15, %s733_s24  ;;  %p739_p7 = scmp.lt.s32.totalorder %s733_s24, %s733_s24 }
  0x2d   :  { %p740_p8 = por %p739_p7, %p738_p6 }
  0x2f   :  { %p741_p9 = pnand %p740_p8, %p734_p5 }
  0x31   :  { %744 = shalt.err (!%p741_p9)
}
  0x32   :  { %s778_s0 = smov 128   ;;  %s779_s18 = smov 8  }
  0x33   :  { %49 = dma.hbm_to_vmem [thread:$0]  %s873_s3, 2048, %s44_s15, [#allocation7], %s778_s0, %s778_s0, %s779_s18  }
  0x34   :  { %767 = dma.done.wait [#allocation4], 1024  }
  0x35   :  { %768 = vsyncadd [#allocation4], 4294966272 }
  0x36   :  { %769 = dma.done.wait [#allocation7], 3072  }
  0x37   :  { %770 = vsyncadd [#allocation7], 4294964224  ;;  %v663_v0 = vld [vmem:[#allocation6] sm:$0xff]   ;;  %v664_v1 = vld [vmem:[#allocation6 + $0x8] sm:$0xff]  }
  0x38   :  { %591 = vmatprep.subr.bf16.mxu0 %v663_v0  ;;  %v665_v2 = vld [vmem:[#allocation6 + $0x10] sm:$0xff]   ;;  %v666_v3 = vld [vmem:[#allocation6 + $0x18] sm:$0xff]   ;;  %v671_v4 = vld [vmem:[#allocation3] sm:$0xff]  }
  0x39   :  { %592 = vmatpush3.bf16.msra.mxu0 %v663_v0  ;;  %607 = vmatprep.mubr.bf16.mxu0 %v671_v4  ;;  %v667_v5 = vld [vmem:[#allocation6 + $0x20] sm:$0xff]   ;;  %v668_v6 = vld [vmem:[#allocation6 + $0x28] sm:$0xff]   ;;  %v669_v7 = vld [vmem:[#allocation6 + $0x30] sm:$0xff]  }
  0x3a   :  { %593 = vmatprep.subr.bf16.mxu0 %v664_v1  ;;  %v670_v8 = vld [vmem:[#allocation6 + $0x38] sm:$0xff]   ;;  %v672_v9 = vld [vmem:[#allocation3 + $0x8] sm:$0xff]   ;;  %v673_v10 = vld [vmem:[#allocation3 + $0x10] sm:$0xff]  }
  0x3b   :  { %v674_v11 = vld [vmem:[#allocation3 + $0x18] sm:$0xff]   ;;  %v675_v12 = vld [vmem:[#allocation3 + $0x20] sm:$0xff]   ;;  %v676_v13 = vld [vmem:[#allocation3 + $0x28] sm:$0xff]  }
  0x3c   :  { %v677_v14 = vld [vmem:[#allocation3 + $0x30] sm:$0xff]   ;;  %v678_v15 = vld [vmem:[#allocation3 + $0x38] sm:$0xff]   ;;  %v320_v16 = vld [vmem:[#allocation8] sm:$0xff] }
  0x3d   :  { %594 = vmatpush3.bf16.msra.mxu0 %v664_v1  ;;  %v321_v17 = vld [vmem:[#allocation8 + $0x8] sm:$0xff]  ;;  %v542_v20 = vld [vmem:[%s872_s2] ss:$0 sm:$0xff]  ;;  %v322_v60 = vld [vmem:[#allocation8 + $0x10] sm:$0xff]  ;;  %s780_s2 = smov [#allocation9]  }
  0x3e   :  { %595 = vmatprep.subr.bf16.mxu0 %v665_v2  ;;  %v336_v18 = vpack.c.bf16 %v321_v17, %v320_v16  ;;  %v323_v61 = vld [vmem:[#allocation8 + $0x18] sm:$0xff]  ;;  %v324_v62 = vld [vmem:[#allocation8 + $0x20] sm:$0xff]  ;;  %v325_v63 = vld [vmem:[#allocation8 + $0x28] sm:$0xff]  ;;  %s529_s28 = sshll.u32 %s780_s2, 4  ;;  %s530_s28 = int_to_ptr.vmem [resolvable:$true] %s529_s28 }
  0x3f   :  { %v337_v0 = vpack.c.bf16 %v323_v61, %v322_v60  ;;  %v338_v1 = vpack.c.bf16 %v325_v63, %v324_v62  ;;  %v328_v4 = vld [vmem:[#allocation8 + $0x40] sm:$0xff]  ;;  %s745_s29 = scalar_lea.vmem %s530_s28, 2048  ;;  %p750_p11 = scmp.lt.s32.totalorder %s530_s28, %s530_s28 }
  0x40   :  { %639 = vmatprep.mubr.bf16.mxu1 %v336_v18  ;;  %p746_p10 = scmp.ne.s32.totalorder %s530_s28, %s745_s29  ;;  %p751_p12 = scmp.lt.s32.totalorder %s745_s29, %s745_s29 }
  0x41   :  { %596 = vmatpush3.bf16.msra.mxu0 %v665_v2  ;;  %v326_v2 = vld [vmem:[#allocation8 + $0x30] sm:$0xff] }
  0x42   :  { %597 = vmatprep.subr.bf16.mxu0 %v666_v3  ;;  %p752_p13 = por %p751_p12, %p750_p11 }
  0x44   :  { %p753_p0 = pnand %p752_p13, %p746_p10 }
  0x45   :  { %598 = vmatpush3.bf16.msra.mxu0 %v666_v3  ;;  %v327_v3 = vld [vmem:[#allocation8 + $0x38] sm:$0xff] }
  0x46   :  { %599 = vmatprep.subr.bf16.mxu0 %v667_v5 }
  0x49   :  { %600 = vmatpush3.bf16.msra.mxu0 %v667_v5  ;;  %v329_v5 = vld [vmem:[#allocation8 + $0x48] sm:$0xff] }
  0x4a   :  { %601 = vmatprep.subr.bf16.mxu0 %v668_v6 }
  0x4d   :  { %602 = vmatpush3.bf16.msra.mxu0 %v668_v6  ;;  %v339_v6 = vpack.c.bf16 %v327_v3, %v326_v2 }
  0x4e   :  { %603 = vmatprep.subr.bf16.mxu0 %v669_v7 }
  0x51   :  { %604 = vmatpush3.bf16.msra.mxu0 %v669_v7  ;;  %v340_v7 = vpack.c.bf16 %v329_v5, %v328_v4 }
  0x52   :  { %605 = vmatprep.subr.bf16.mxu0 %v670_v8 }
  0x55   :  { %606 = vmatpush3.bf16.msra.mxu0 %v670_v8  ;;  %v330_v8 = vld [vmem:[#allocation8 + $0x50] sm:$0xff] }
  0x58   :  { %608 = vmatmul.mubr.bf16.vlgmr.msra.gmra.mrb[0].mxu0 %v672_v9  ;;  %v331_v9 = vld [vmem:[#allocation8 + $0x58] sm:$0xff] }
  0x59   :  { %611 = vmatprep.mubr.bf16.mxu0 %v673_v10  ;;  %v332_v10 = vld [vmem:[#allocation8 + $0x60] sm:$0xff] }
  0x60   :  { %612 = vmatmul.mubr.bf16.gmra.mrb[4].mxu0 %v674_v11  ;;  %v333_v11 = vld [vmem:[#allocation8 + $0x68] sm:$0xff] }
  0x61   :  { %615 = vmatprep.mubr.bf16.mxu0 %v675_v12  ;;  %v341_v12 = vpack.c.bf16 %v331_v9, %v330_v8 }
  0x68   :  { %616 = vmatmul.mubr.bf16.gmra.mrb[8].mxu0 %v676_v13  ;;  %v342_v13 = vpack.c.bf16 %v333_v11, %v332_v10 }
  0x69   :  { %619 = vmatprep.mubr.bf16.mxu0 %v677_v14  ;;  %v334_v14 = vld [vmem:[#allocation8 + $0x70] sm:$0xff] }
  0x70   :  { %620 = vmatmul.mubr.bf16.gmra.mrb[12].mxu0 %v678_v15  ;;  %v335_v15 = vld [vmem:[#allocation8 + $0x78] sm:$0xff] }
  0x71   :  { %v343_v16 = vpack.c.bf16 %v335_v15, %v334_v14 }
 0x12b   :  { %v609_v19 = vpop.f32.mrb[0].mxu0 }
 0x12c   :  { %v249_v21 = vpop.f32.mrb[1].mxu0  ;;  %v258_v23 = vadd.f32 %v609_v19, %v542_v20 }
 0x12d   :  { %v610_v22 = vpop.f32.mrb[2].mxu0  ;;  %v250_v26 = vadd.f32 %v542_v20, %v249_v21 }
 0x12e   :  { %v261_v24 = vadd.f32 %v610_v22, %v542_v20  ;;  %v252_v25 = vpop.f32.mrb[3].mxu0 }
 0x12f   :  { %v253_v27 = vadd.f32 %v542_v20, %v252_v25 }
 0x130   :  { %v313_v28 = vpack.c.bf16 %v261_v24, %v258_v23 }
 0x131   :  { %v312_v29 = vpack.c.bf16 %v253_v27, %v250_v26 }
 0x133   :  { %v613_v30 = vpop.f32.mrb[4].mxu0  ;;  %623 = vmatprep.subr.bf16.mxu1 %v312_v29 }
 0x134   :  { %v265_v31 = vpop.f32.mrb[5].mxu0  ;;  %624 = vmatpush3.bf16.msra.mxu1 %v312_v29  ;;  %v274_v33 = vadd.f32 %v613_v30, %v542_v20 }
 0x135   :  { %v614_v32 = vpop.f32.mrb[6].mxu0  ;;  %625 = vmatprep.subr.bf16.mxu1 %v313_v28  ;;  %v266_v36 = vadd.f32 %v542_v20, %v265_v31 }
 0x136   :  { %v277_v34 = vadd.f32 %v614_v32, %v542_v20  ;;  %v268_v35 = vpop.f32.mrb[7].mxu0 }
 0x137   :  { %v269_v37 = vadd.f32 %v542_v20, %v268_v35 }
 0x138   :  { %v315_v38 = vpack.c.bf16 %v277_v34, %v274_v33  ;;  %626 = vmatpush3.bf16.msra.mxu1 %v313_v28 }
 0x139   :  { %v314_v39 = vpack.c.bf16 %v269_v37, %v266_v36 }
 0x13b   :  { %v617_v40 = vpop.f32.mrb[8].mxu0  ;;  %627 = vmatprep.subr.bf16.mxu1 %v314_v39 }
 0x13c   :  { %v281_v41 = vpop.f32.mrb[9].mxu0  ;;  %628 = vmatpush3.bf16.msra.mxu1 %v314_v39  ;;  %v290_v43 = vadd.f32 %v617_v40, %v542_v20 }
 0x13d   :  { %v618_v42 = vpop.f32.mrb[10].mxu0  ;;  %629 = vmatprep.subr.bf16.mxu1 %v315_v38  ;;  %v282_v46 = vadd.f32 %v542_v20, %v281_v41 }
 0x13e   :  { %v293_v44 = vadd.f32 %v618_v42, %v542_v20  ;;  %v284_v45 = vpop.f32.mrb[11].mxu0 }
 0x13f   :  { %v285_v47 = vadd.f32 %v542_v20, %v284_v45 }
 0x140   :  { %v317_v48 = vpack.c.bf16 %v293_v44, %v290_v43  ;;  %630 = vmatpush3.bf16.msra.mxu1 %v315_v38 }
 0x141   :  { %v316_v49 = vpack.c.bf16 %v285_v47, %v282_v46 }
 0x143   :  { %v621_v50 = vpop.f32.mrb[12].mxu0  ;;  %631 = vmatprep.subr.bf16.mxu1 %v316_v49 }
 0x144   :  { %v297_v51 = vpop.f32.mrb[13].mxu0  ;;  %632 = vmatpush3.bf16.msra.mxu1 %v316_v49  ;;  %v306_v53 = vadd.f32 %v621_v50, %v542_v20 }
 0x145   :  { %v622_v52 = vpop.f32.mrb[14].mxu0  ;;  %633 = vmatprep.subr.bf16.mxu1 %v317_v48  ;;  %v298_v56 = vadd.f32 %v542_v20, %v297_v51 }
 0x146   :  { %v309_v54 = vadd.f32 %v622_v52, %v542_v20  ;;  %v300_v55 = vpop.f32.mrb[15].mxu0 }
 0x147   :  { %v301_v57 = vadd.f32 %v542_v20, %v300_v55 }
 0x148   :  { %v319_v58 = vpack.c.bf16 %v309_v54, %v306_v53  ;;  %634 = vmatpush3.bf16.msra.mxu1 %v317_v48 }
 0x149   :  { %v318_v59 = vpack.c.bf16 %v301_v57, %v298_v56 }
 0x14b   :  { %635 = vmatprep.subr.bf16.mxu1 %v318_v59 }
 0x14c   :  { %636 = vmatpush3.bf16.msra.mxu1 %v318_v59 }
 0x14d   :  { %637 = vmatprep.subr.bf16.mxu1 %v319_v58 }
 0x150   :  { %638 = vmatpush3.bf16.msra.mxu1 %v319_v58 }
 0x153   :  { %640 = vmatmul.mubr.bf16.vlgmr.msra.gmra.mrb[0].mxu1 %v337_v0 }
 0x154   :  { %643 = vmatprep.mubr.bf16.mxu1 %v338_v1 }
 0x15b   :  { %644 = vmatmul.mubr.bf16.gmra.mrb[4].mxu1 %v339_v6 }
 0x15c   :  { %647 = vmatprep.mubr.bf16.mxu1 %v340_v7 }
 0x163   :  { %648 = vmatmul.mubr.bf16.gmra.mrb[8].mxu1 %v341_v12 }
 0x164   :  { %651 = vmatprep.mubr.bf16.mxu1 %v342_v13 }
 0x16b   :  { %652 = vmatmul.mubr.bf16.gmra.mrb[12].mxu1 %v343_v16 }
 0x226   :  { %v641_v17 = vpop.f32.mrb[0].mxu1 }
 0x227   :  { %510 = vst [vmem:[#allocation9 + $0x10] sm:$0xff] %v641_v17  ;;  %v394_v18 = vpop.f32.mrb[1].mxu1 }
 0x228   :  { %508 = vst [vmem:[#allocation9] sm:$0xff] %v394_v18  ;;  %v642_v19 = vpop.f32.mrb[2].mxu1 }
 0x229   :  { %511 = vst [vmem:[#allocation9 + $0x18] sm:$0xff] %v642_v19  ;;  %v397_v20 = vpop.f32.mrb[3].mxu1 }
 0x22a   :  { %509 = vst [vmem:[#allocation9 + $0x8] sm:$0xff] %v397_v20 }
 0x22e   :  { %v645_v21 = vpop.f32.mrb[4].mxu1 }
 0x22f   :  { %514 = vst [vmem:[#allocation9 + $0x30] sm:$0xff] %v645_v21  ;;  %v410_v22 = vpop.f32.mrb[5].mxu1 }
 0x230   :  { %512 = vst [vmem:[#allocation9 + $0x20] sm:$0xff] %v410_v22  ;;  %v646_v23 = vpop.f32.mrb[6].mxu1 }
 0x231   :  { %515 = vst [vmem:[#allocation9 + $0x38] sm:$0xff] %v646_v23  ;;  %v413_v24 = vpop.f32.mrb[7].mxu1 }
 0x232   :  { %513 = vst [vmem:[#allocation9 + $0x28] sm:$0xff] %v413_v24 }
 0x236   :  { %v649_v25 = vpop.f32.mrb[8].mxu1 }
 0x237   :  { %518 = vst [vmem:[#allocation9 + $0x50] sm:$0xff] %v649_v25  ;;  %v426_v26 = vpop.f32.mrb[9].mxu1 }
 0x238   :  { %516 = vst [vmem:[#allocation9 + $0x40] sm:$0xff] %v426_v26  ;;  %v650_v27 = vpop.f32.mrb[10].mxu1 }
 0x239   :  { %519 = vst [vmem:[#allocation9 + $0x58] sm:$0xff] %v650_v27  ;;  %v429_v28 = vpop.f32.mrb[11].mxu1 }
 0x23a   :  { %517 = vst [vmem:[#allocation9 + $0x48] sm:$0xff] %v429_v28 }
 0x23e   :  { %v653_v29 = vpop.f32.mrb[12].mxu1 }
 0x23f   :  { %522 = vst [vmem:[#allocation9 + $0x70] sm:$0xff] %v653_v29  ;;  %v442_v30 = vpop.f32.mrb[13].mxu1 }
 0x240   :  { %520 = vst [vmem:[#allocation9 + $0x60] sm:$0xff] %v442_v30  ;;  %v654_v31 = vpop.f32.mrb[14].mxu1 }
 0x241   :  { %523 = vst [vmem:[#allocation9 + $0x78] sm:$0xff] %v654_v31  ;;  %v445_v32 = vpop.f32.mrb[15].mxu1 }
 0x242   :  { %521 = vst [vmem:[#allocation9 + $0x68] sm:$0xff] %v445_v32 }
 0x243   :  { %756 = shalt.err (!%p753_p0)
}
 0x244   :  { %s757_s6 = scalar_lea.hbm %s874_s4, 2048 }
 0x245   :  { %p758_p1 = scmp.ne.s32.totalorder %s874_s4, %s757_s6  ;;  %p761_p2 = scmp.lt.u32.totalorder %s757_s6, %s874_s4 }
 0x247   :  { %p763_p3 = pnand %p761_p2, %p758_p1 }
 0x249   :  { %766 = shalt.err (!%p763_p3)
}
 0x24a   :  { %535 = dma.vmem_to_hbm [thread:$0]  %s530_s28, 2048, %s874_s4, [#allocation5], %s778_s0, %s778_s0, %s779_s18  }
 0x24b   :  { %771 = dma.done.wait [#allocation5], 2048  }
 0x24c   :  { %772 = vsyncadd [#allocation5], 4294965248 }
 0x24d   :  { %539 = vsyncpa [#allocation4], 1 }
 0x24e   :  { %540 = vsyncpa [#allocation7], 1 }
 0x24f   :  { %541 = vsyncpa [#allocation5], 1 }

</bundles_post_ra>
